<compile_context>
chip_gen: v6e
topology: v6e:2x2x1
jax: 0.10.0
libtpu: 0.0.40
codegen_flags: <defaults>
</compile_context>

<pallas_src>
import functools
import math

import jax
import jax.numpy as jnp
from jax.experimental import pallas as pl
from jax.experimental.pallas import tpu as pltpu


def _dice_sums_kernel(x_ref, lab_ref, out_ref, acc_i_ref, acc_d_ref, *, hw):
    """One (C, T) tile of logits + (1, T) tile of int labels.

    Accumulates lane-dense partials of
        intersect[c]   = sum_n softmax(x)[c, n] * onehot[c, n]
        denominator[c] = sum_n softmax(x)[c, n]**2 + onehot[c, n]**2
    into VMEM scratch; reduces over lanes and stores (C, 2) on the last step.
    """
    s = pl.program_id(1)
    n_s = pl.num_programs(1)
    c, t = x_ref.shape

    @pl.when(s == 0)
    def _():
        acc_i_ref[...] = jnp.zeros_like(acc_i_ref)
        acc_d_ref[...] = jnp.zeros_like(acc_d_ref)

    x = x_ref[...].astype(jnp.float32)     # (C, T): channels on sublanes, spatial on lanes
    lab = lab_ref[...]                     # (1, T) int32 class labels

    needs_mask = (hw % t) != 0             # static (trace-time) decision
    if needs_mask:
        col = jax.lax.broadcasted_iota(jnp.int32, (1, t), 1) + s * t
        valid = col < hw
        x = jnp.where(valid, x, 0.0)       # keep padded lanes finite through softmax

    # softmax over channels (sublane axis) == F.softmax(x, 1) in NCHW
    m = jnp.max(x, axis=0, keepdims=True)
    e = jnp.exp(x - m)
    # exact reciprocal keeps the tight 1e-5 self-check vs. the reference
    p = e * pl.reciprocal(jnp.sum(e, axis=0, keepdims=True), approx=False)

    # one-hot target built in-kernel from integer labels (no HBM one-hot tensor)
    ch = jax.lax.broadcasted_iota(jnp.int32, (c, t), 0)
    onehot = lab == ch                     # (C, T) bool
    if needs_mask:
        onehot = jnp.logical_and(onehot, valid)
        p = jnp.where(valid, p, 0.0)       # keep padded p**2 out of the denominator
    y = onehot.astype(jnp.float32)

    # lane-dense VPU accumulation; cross-lane reduce deferred to the last step
    acc_i_ref[...] += p * y
    acc_d_ref[...] += p * p + y            # y**2 == y for a {0,1} one-hot

    @pl.when(s == n_s - 1)
    def _():
        si = jnp.sum(acc_i_ref[...], axis=-1, keepdims=True)   # (C, 1)
        sd = jnp.sum(acc_d_ref[...], axis=-1, keepdims=True)   # (C, 1)
        out_ref[...] = jnp.concatenate([si, sd], axis=1)        # (C, 2)


def _round_up(v, m):
    return ((v + m - 1) // m) * m


def _pick_tile_hw(hw, c):
    """Spatial tile (lanes per step). Sized so 2x pipeline buffers of both inputs plus
    the two f32 accumulators stay well under the smallest scoped-VMEM default."""
    c_pad = _round_up(max(c, 8), 8)
    # conservative per-lane VMEM bytes (f32-equivalent sublane padding):
    #   x: 2 bufs            labels (int32, 8 sublanes): 2 bufs       2 f32 accumulators
    per_lane = 2 * c_pad * 4 + 2 * 8 * 4 + 2 * c_pad * 4
    budget = 6 * 1024 * 1024
    tile = max(128, (budget // per_lane) // 128 * 128)
    return int(min(tile, _round_up(hw, 128)))


def _dice_sums(x3, lab3, *, tile_hw):
    """x3: (B, C, HW) logits (native dtype); lab3: (B, 1, HW) int32 labels.
    Returns (B, C, 2) per-batch partial [intersect, denominator] sums."""
    b, c, hw = x3.shape
    n_s = pl.cdiv(hw, tile_hw)
    kernel = functools.partial(_dice_sums_kernel, hw=hw)
    return pl.pallas_call(
        kernel,
        out_shape=jax.ShapeDtypeStruct((b, c, 2), jnp.float32),
        grid_spec=pltpu.PrefetchScalarGridSpec(
            num_scalar_prefetch=0,
            grid=(b, n_s),
            in_specs=[
                pl.BlockSpec((None, c, tile_hw), lambda i, s: (i, 0, s)),
                pl.BlockSpec((None, 1, tile_hw), lambda i, s: (i, 0, s)),
            ],
            out_specs=pl.BlockSpec((None, c, 2), lambda i, s: (i, 0, 0)),
            scratch_shapes=[
                pltpu.VMEM((c, tile_hw), jnp.float32),
                pltpu.VMEM((c, tile_hw), jnp.float32),
            ],
        ),
        compiler_params=pltpu.CompilerParams(
            dimension_semantics=("parallel", "arbitrary"),
            vmem_limit_bytes=32 * 1024 * 1024,
        ),
    )(x3, lab3)


@functools.partial(jax.jit, static_argnames=("do_bg", "smooth"))
def soft_dice_loss_squared(x, y, do_bg=False, smooth=1e-5):
    """x: (B, C, *spatial) float logits; y: (B, *spatial) or (B, 1, *spatial) int labels."""
    b, c = x.shape[0], x.shape[1]
    hw = math.prod(x.shape[2:])

    if y.ndim == x.ndim:
        if y.shape == x.shape and c != 1:
            # TODO(synk): pre-one-hot / soft-label targets (y.shape == x.shape) are not
            # kernelized; only integer class-label targets are handled here.
            raise NotImplementedError("Pallas SoftDiceLossSquared expects integer labels")
        y = jnp.squeeze(y, axis=1)

    x3 = x.reshape(b, c, hw)                      # NC(spatial) flatten: no transpose, no copy
    lab3 = y.reshape(b, 1, hw).astype(jnp.int32)  # labels ride along as (B, 1, HW) int32

    tile_hw = _pick_tile_hw(hw, c)
    sums = _dice_sums(x3, lab3, tile_hw=tile_hw)  # (B, C, 2) per-batch partials
    sums = jnp.sum(sums, axis=0)                  # (C, 2)

    intersect = sums[:, 0] + smooth
    denominator = sums[:, 1] + smooth
    dc = 2.0 * intersect / denominator            # (C,)
    if not do_bg:
        dc = dc[1:]
    return 1.0 - jnp.mean(dc)


def _reference(x, y, do_bg=False, smooth=1e-5):
    """Pure-JAX reference mirroring the PyTorch forward."""
    c = x.shape[1]
    p = jax.nn.softmax(x.astype(jnp.float32), axis=1)
    y_onehot = jax.nn.one_hot(y.astype(jnp.int32), c, axis=1, dtype=jnp.float32)
    axes = (0,) + tuple(range(2, x.ndim))
    intersect = jnp.sum(p * y_onehot, axis=axes) + smooth
    denominator = jnp.sum(p ** 2 + y_onehot ** 2, axis=axes) + smooth
    dc = 2.0 * intersect / denominator
    if not do_bg:
        dc = dc[1:]
    return 1.0 - jnp.mean(dc)


if __name__ == "__main__":
    key = jax.random.PRNGKey(0)
    kx, ky = jax.random.split(key)

    B, C, H, W = 2, 4, 16, 16
    x = jax.random.normal(kx, (B, C, H, W), dtype=jnp.float32)
    y = jax.random.randint(ky, (B, H, W), 0, C, dtype=jnp.int32)

    loss = soft_dice_loss_squared(x, y)
    jax.block_until_ready(loss)

    ref = _reference(x, y)
    assert jnp.allclose(loss, ref, atol=1e-5, rtol=1e-5), (loss, ref)

    print("KERNEL_OK")
</pallas_src>

<mosaic_0001>
module attributes {stable_mosaic.version = 11 : i64} {
  func.func @_dice_sums_kernel(%arg0: i32, %arg1: i32, %arg2: memref<1x4x256xf32, #tpu.memory_space<vmem>>, %arg3: memref<1x1x256xi32, #tpu.memory_space<vmem>>, %arg4: memref<1x4x2xf32, #tpu.memory_space<vmem>>, %arg5: memref<4x256xf32, #tpu.memory_space<vmem>>, %arg6: memref<4x256xf32, #tpu.memory_space<vmem>>) attributes {dimension_semantics = [#tpu.dimension_semantics<parallel>, #tpu.dimension_semantics<arbitrary>], iteration_bounds = array<i64: 2, 1>, scalar_prefetch = 0 : i64, scratch_operands = 2 : i64, tpu.core_type = #tpu.core_type<tc>, window_params = [{transform_indices = @transform_0, window_bounds = array<i64: 1, 4, 256>}, {transform_indices = @transform_1, window_bounds = array<i64: 1, 1, 256>}, {transform_indices = @transform_2, window_bounds = array<i64: 1, 4, 2>}]} {
    %c0_i32 = arith.constant 0 : i32
    %0 = arith.cmpi eq, %arg1, %c0_i32 : i32
    %1 = arith.extui %0 : i1 to i32
    %c0_i32_0 = arith.constant 0 : i32
    %2 = arith.cmpi ne, %1, %c0_i32_0 : i32
    scf.if %2 {
      %cst_17 = arith.constant 0.000000e+00 : f32
      %34 = vector.broadcast %cst_17 : f32 to vector<4x256xf32>
      %c0_18 = arith.constant 0 : index
      %c0_19 = arith.constant 0 : index
      %35 = vector.load %arg5[%c0_18, %c0_19] : memref<4x256xf32, #tpu.memory_space<vmem>>, vector<4x256xf32>
      tpu.vector_store %arg5[%c0_18, %c0_19], %34 {strides = array<i32>} : memref<4x256xf32, #tpu.memory_space<vmem>>, vector<4x256xf32>,
      %cst_20 = arith.constant 0.000000e+00 : f32
      %36 = vector.broadcast %cst_20 : f32 to vector<4x256xf32>
      %c0_21 = arith.constant 0 : index
      %c0_22 = arith.constant 0 : index
      %37 = vector.load %arg6[%c0_21, %c0_22] : memref<4x256xf32, #tpu.memory_space<vmem>>, vector<4x256xf32>
      tpu.vector_store %arg6[%c0_21, %c0_22], %36 {strides = array<i32>} : memref<4x256xf32, #tpu.memory_space<vmem>>, vector<4x256xf32>,
    } else {
    }
    %c0 = arith.constant 0 : index
    %c0_1 = arith.constant 0 : index
    %c0_2 = arith.constant 0 : index
    %3 = vector.load %arg2[%c0, %c0_1, %c0_2] : memref<1x4x256xf32, #tpu.memory_space<vmem>>, vector<1x4x256xf32>
    %4 = vector.shape_cast %3 : vector<1x4x256xf32> to vector<4x256xf32>
    %c0_3 = arith.constant 0 : index
    %c0_4 = arith.constant 0 : index
    %c0_5 = arith.constant 0 : index
    %5 = vector.load %arg3[%c0_3, %c0_4, %c0_5] : memref<1x1x256xi32, #tpu.memory_space<vmem>>, vector<1x1x256xi32>
    %6 = vector.shape_cast %5 : vector<1x1x256xi32> to vector<1x256xi32>
    %cst = arith.constant dense<0xFF800000> : vector<256xf32>
    %7 = vector.multi_reduction <maximumf>, %4, %cst [0] : vector<4x256xf32> to vector<256xf32>
    %8 = vector.shape_cast %7 : vector<256xf32> to vector<1x256xf32>
    %9 = vector.broadcast %8 : vector<1x256xf32> to vector<4x256xf32>
    %10 = arith.subf %4, %9 : vector<4x256xf32>
    %11 = math.exp %10 : vector<4x256xf32>
    %cst_6 = arith.constant dense<0.000000e+00> : vector<256xf32>
    %12 = vector.multi_reduction <add>, %11, %cst_6 [0] : vector<4x256xf32> to vector<256xf32>
    %13 = vector.shape_cast %12 : vector<256xf32> to vector<1x256xf32>
    %14 = tpu.reciprocal %13 : vector<1x256xf32> -> vector<1x256xf32>
    %15 = vector.broadcast %14 : vector<1x256xf32> to vector<4x256xf32>
    %16 = arith.mulf %11, %15 : vector<4x256xf32>
    %17 = tpu.iota {dimensions = array<i32: 0>} : vector<4x256xi32>
    %18 = vector.broadcast %6 : vector<1x256xi32> to vector<4x256xi32>
    %19 = arith.cmpi eq, %18, %17 : vector<4x256xi32>
    %20 = arith.extui %19 : vector<4x256xi1> to vector<4x256xi32>
    %21 = arith.sitofp %20 : vector<4x256xi32> to vector<4x256xf32>
    %c0_7 = arith.constant 0 : index
    %c0_8 = arith.constant 0 : index
    %22 = vector.load %arg5[%c0_7, %c0_8] : memref<4x256xf32, #tpu.memory_space<vmem>>, vector<4x256xf32>
    %23 = arith.mulf %16, %21 : vector<4x256xf32>
    %24 = arith.addf %22, %23 : vector<4x256xf32>
    %c0_9 = arith.constant 0 : index
    %c0_10 = arith.constant 0 : index
    %25 = vector.load %arg5[%c0_9, %c0_10] : memref<4x256xf32, #tpu.memory_space<vmem>>, vector<4x256xf32>
    tpu.vector_store %arg5[%c0_9, %c0_10], %24 {strides = array<i32>} : memref<4x256xf32, #tpu.memory_space<vmem>>, vector<4x256xf32>,
    %c0_11 = arith.constant 0 : index
    %c0_12 = arith.constant 0 : index
    %26 = vector.load %arg6[%c0_11, %c0_12] : memref<4x256xf32, #tpu.memory_space<vmem>>, vector<4x256xf32>
    %27 = arith.mulf %16, %16 : vector<4x256xf32>
    %28 = arith.addf %27, %21 : vector<4x256xf32>
    %29 = arith.addf %26, %28 : vector<4x256xf32>
    %c0_13 = arith.constant 0 : index
    %c0_14 = arith.constant 0 : index
    %30 = vector.load %arg6[%c0_13, %c0_14] : memref<4x256xf32, #tpu.memory_space<vmem>>, vector<4x256xf32>
    tpu.vector_store %arg6[%c0_13, %c0_14], %29 {strides = array<i32>} : memref<4x256xf32, #tpu.memory_space<vmem>>, vector<4x256xf32>,
    %c0_i32_15 = arith.constant 0 : i32
    %31 = arith.cmpi eq, %arg1, %c0_i32_15 : i32
    %32 = arith.extui %31 : i1 to i32
    %c0_i32_16 = arith.constant 0 : i32
    %33 = arith.cmpi ne, %32, %c0_i32_16 : i32
    scf.if %33 {
      %c0_17 = arith.constant 0 : index
      %c0_18 = arith.constant 0 : index
      %34 = vector.load %arg5[%c0_17, %c0_18] : memref<4x256xf32, #tpu.memory_space<vmem>>, vector<4x256xf32>
      %cst_19 = arith.constant dense<0.000000e+00> : vector<4xf32>
      %35 = vector.multi_reduction <add>, %34, %cst_19 [1] : vector<4x256xf32> to vector<4xf32>
      %36 = vector.shape_cast %35 : vector<4xf32> to vector<4x1xf32>
      %c0_20 = arith.constant 0 : index
      %c0_21 = arith.constant 0 : index
      %37 = vector.load %arg6[%c0_20, %c0_21] : memref<4x256xf32, #tpu.memory_space<vmem>>, vector<4x256xf32>
      %cst_22 = arith.constant dense<0.000000e+00> : vector<4xf32>
      %38 = vector.multi_reduction <add>, %37, %cst_22 [1] : vector<4x256xf32> to vector<4xf32>
      %39 = vector.shape_cast %38 : vector<4xf32> to vector<4x1xf32>
      %40 = tpu.concatenate %36, %39 in 1 : vector<4x1xf32>, vector<4x1xf32> -> vector<4x2xf32>
      %c0_23 = arith.constant 0 : index
      %c0_24 = arith.constant 0 : index
      %c0_25 = arith.constant 0 : index
      %41 = vector.load %arg4[%c0_23, %c0_24, %c0_25] : memref<1x4x2xf32, #tpu.memory_space<vmem>>, vector<1x4x2xf32>
      %42 = vector.shape_cast %41 : vector<1x4x2xf32> to vector<4x2xf32>
      %43 = vector.shape_cast %40 : vector<4x2xf32> to vector<1x4x2xf32>
      tpu.vector_store %arg4[%c0_23, %c0_24, %c0_25], %43 {strides = array<i32>} : memref<1x4x2xf32, #tpu.memory_space<vmem>>, vector<1x4x2xf32>,
    } else {
    }
    return
  }
  func.func @transform_0(%arg0: i32, %arg1: i32) -> (i32, i32, i32) {
    %c0_i32 = arith.constant 0 : i32
    %c0_i32_0 = arith.constant 0 : i32
    return %arg0, %c0_i32, %arg1 : i32, i32, i32
  }
  func.func @transform_1(%arg0: i32, %arg1: i32) -> (i32, i32, i32) {
    %c0_i32 = arith.constant 0 : i32
    %c0_i32_0 = arith.constant 0 : i32
    return %arg0, %c0_i32, %arg1 : i32, i32, i32
  }
  func.func @transform_2(%arg0: i32, %arg1: i32) -> (i32, i32, i32) {
    %c0_i32 = arith.constant 0 : i32
    %c0_i32_0 = arith.constant 0 : i32
    %c0_i32_1 = arith.constant 0 : i32
    return %arg0, %c0_i32, %c0_i32_0 : i32, i32, i32
  }
}

</mosaic_0001>

<bundles_post_ra>
// kernel: soft_dice_loss_squared.1
= control target key start
LH: loop header
LB: loop body
LE: loop exit
PB: predicated region body
PF: predicated region fallthrough
CT: control target
= control target key end

     0   :  { %s482_s9 = smov 0   ;;  %s484_s10 = smov 0   ;;  %s531_s0 = inlined_call_operand.vmem [shape: f32[2,4,256], index: 0, kind: input, shape index: {}]   ;;  %s532_s1 = inlined_call_operand.vmem [shape: s32[2,1,256], index: 1, kind: input, shape index: {}]   ;;  %s533_s2 = inlined_call_operand.vmem [shape: f32[2,4,2], index: 2, kind: output, shape index: {}]  }
   0x1   :  { %s486_s11 = smov 0  }
   0x2 LB: > { %s24_s12 = sadd.s32 1, %s460_s10  ;;  %p400_p0 = scmp.ge.s32.totalorder %s464_s11, 1  ;;  %s464_s11 = sphi %s486_s11, %s12_s11   ;;  %s460_s10 = sphi %s484_s10, %s535_s10   ;;  %s456_s9 = sphi %s482_s9, %s534_s9  }
   0x3   : > { %p26_p1 = scmp.ge.s32.totalorder %s24_s12, 2  ;;  %p147_p2 = scmp.lt.s32.totalorder %s464_s11, 3 }
   0x5   : > { %s537_s12 = smov (%p26_p1, %s24_s12), 0  ;;  %p148_p3 = pnand %p400_p0, %p147_p2 }
   0x6   : > { %p181_p4 = scmp.lt.s32.totalorder (!%p148_p3), %s456_s9, 1 }
   0x7   : > { %151 = sbr.rel (%p148_p3) target bundleno = 235 (0xeb), region = 28 }
   0xc   : > { %s539_s9 = smov (!%p181_p4, %s456_s9), 1  ;;  %vm214_vm0 = vcmask 1043456   ;;  %v260_v30 = vlaneseq  ;;  %v466_v43 = vmov 0.0   ;;  %vm310_vm3 = vcmask 7168  }
   0xd   : > { %s409_s13 = sshll.u32 %s539_s9, 3  ;;  %s403_s17 = sshll.u32 %s539_s9, 1  ;;  %vm312_vm4 = vcmask 11264  }
   0xe   : > { %s188_s16 = scalar_lea.vmem %s531_s0, %s409_s13  ;;  %v261_v35 = vshrl.u32 %v260_v30, 7  ;;  %s197_s20 = scalar_lea.vmem %s532_s1, %s403_s17 }
   0xf   : > { %v209_v0 = vld [vmem:[%s188_s16] sm:$0xff]  ;;  %s404_s21 = sshll.u32 %s539_s9, 2 }
  0x10   : > { %v212_v1 = vcombine.high %v209_v0, %v209_v0  ;;  %v215_v2 = vsel %vm214_vm0, %v209_v0, -inf  ;;  %v264_v37 = vsub.s32 0, %v261_v35  ;;  %v268_v38 = vsub.s32 1, %v261_v35  ;;  %v210_v39 = vld [vmem:[%s197_s20] sm:$0x3]  ;;  %s202_s24 = scalar_lea.vmem %s533_s2, %s404_s21 }
  0x11   : > { %v216_v3 = vrot.slane %v215_v2, 4 }
  0x12   : > { %v222_v4 = vsel %vm214_vm0, %v212_v1, -inf  ;;  %v265_v40 = vrot.slane %v210_v39, %v264_v37  ;;  %v269_v41 = vrot.slane %v210_v39, %v268_v38 }
  0x13   : > { %v217_v5 = vmax.f32 %v215_v2, %v216_v3  ;;  %v223_v6 = vrot.slane %v222_v4, 4 }
  0x14   : > { %vm270_vm1 = vcmp.eq.s32.totalorder %v265_v40, %v261_v35  ;;  %vm271_vm2 = vcmp.eq.s32.totalorder %v269_v41, %v261_v35 }
  0x15   : > { %v218_v7 = vrot.slane %v217_v5, 2  ;;  %v224_v8 = vmax.f32 %v222_v4, %v223_v6  ;;  %v405_v44 = vsel %vm270_vm1, 1.0, %v466_v43  ;;  %v406_v45 = vsel %vm271_vm2, 1.0, %v466_v43 }
  0x16   : > { %v279_v48 = vcombine.low %v405_v44, %v406_v45 }
  0x17   : > { %v219_v9 = vmax.f32 %v217_v5, %v218_v7  ;;  %v225_v10 = vrot.slane %v224_v8, 2 }
  0x19   : > { %v220_v11 = vrot.slane %v219_v9, 1  ;;  %v226_v12 = vmax.f32 %v224_v8, %v225_v10 }
  0x1b   : > { %v221_v13 = vmax.f32 %v219_v9, %v220_v11  ;;  %v227_v14 = vrot.slane %v226_v12, 1 }
  0x1d   : > { %v228_v15 = vmax.f32 %v226_v12, %v227_v14 }
  0x1f   : > { %v231_v16 = vcombine.low %v221_v13, %v228_v15 }
  0x21   : > { %v233_v17 = vsub.f32 %v209_v0, %v231_v16 }
  0x23   : > { %v234_v18 = vmul.f32 1.442695, %v233_v17 }
  0x25   : > { %436 = vpow2.f32 %v234_v18 }
  0x32   : > { %v437_v19 = vpop.eup %436 }
  0x33   : > { %v237_v20 = vcombine.high %v437_v19, %v437_v19  ;;  %v239_v21 = vsel %vm214_vm0, %v437_v19, 0.0 }
  0x34   : > { %v240_v22 = vrot.slane %v239_v21, 4 }
  0x35   : > { %v246_v23 = vsel %vm214_vm0, %v237_v20, 0.0 }
  0x36   : > { %v241_v24 = vadd.f32 %v240_v22, %v239_v21  ;;  %v247_v25 = vrot.slane %v246_v23, 4 }
  0x38   : > { %v242_v26 = vrot.slane %v241_v24, 2  ;;  %v248_v27 = vadd.f32 %v247_v25, %v246_v23 }
  0x3a   : > { %v243_v28 = vadd.f32 %v242_v26, %v241_v24  ;;  %v249_v29 = vrot.slane %v248_v27, 2 }
  0x3c   : > { %v244_v31 = vrot.slane %v243_v28, 1  ;;  %v250_v32 = vadd.f32 %v249_v29, %v248_v27 }
  0x3e   : > { %v245_v33 = vadd.f32 %v244_v31, %v243_v28  ;;  %v251_v34 = vrot.slane %v250_v32, 1 }
  0x40   : > { %v252_v36 = vadd.f32 %v251_v34, %v250_v32  ;;  %438 = vrcp.f32 %v245_v33 }
  0x42   : > { %440 = vrcp.f32 %v252_v36 }
  0x4d   : > { %v439_v42 = vpop.eup %438 }
  0x4f   : > { %v441_v46 = vpop.eup %440 }
  0x50   : > { %v257_v47 = vcombine.low %v439_v42, %v441_v46 }
  0x52   : > { %v259_v49 = vmul.f32 %v437_v19, %v257_v47 }
  0x54   : > { %v281_v50 = vmul.f32 %v279_v48, %v259_v49  ;;  %v285_v51 = vmul.f32 %v259_v49, %v259_v49 }
  0x56   : > { %v294_v52 = vcombine.high %v281_v50, %v281_v50  ;;  %v296_v53 = vsel %vm214_vm0, %v281_v50, 0.0  ;;  %v286_v54 = vadd.f32 %v285_v51, %v279_v48 }
  0x58   : > { %v297_v55 = vsel %vm214_vm0, %v294_v52, 0.0  ;;  %v303_v56 = vcombine.high %v286_v54, %v286_v54  ;;  %v305_v57 = vsel %vm214_vm0, %v286_v54, 0.0 }
  0x59   : > { %v298_v58 = vadd.f32 %v297_v55, %v296_v53 }
  0x5a   : > { %v306_v59 = vsel %vm214_vm0, %v303_v56, 0.0 }
  0x5b   : > { %299 = vadd.xlane.f32.xlu0 %v298_v58  ;;  %v307_v60 = vadd.f32 %v306_v59, %v305_v57 }
  0x5f   : > { %308 = vadd.xlane.f32.xlu0 %v307_v60 }
  0xe4   : > { %v300_v61 = vpop.xlane.xlu0 %299 }
  0xe8   : > { %v309_v62 = vpop.xlane.xlu0 %308 }
  0xe9   : > { %v311_v63 = vsel %vm310_vm3, %v300_v61, %v309_v62 }
  0xea   : > { %313 = vst.msk [vmem:[%s202_s24] sm:$0xf] %vm312_vm4, %v311_v63 }
  0xeb PF: > { %s12_s11 = sadd.s32 1, %s464_s11   ;;  %s534_s9 = smov %s460_s10 }
  0xec   : > { %p9_p5 = scmp.ge.s32.totalorder %s12_s11, 4   ;;  %s535_s10 = smov %s537_s12 }
  0xee   :  { %11 = sbr.rel (!%p9_p5) target bundleno = 2 (0x2), region = 69 }

</bundles_post_ra>
